<compile_context>
chip_gen: v6e
topology: v6e:2x2x1
jax: 0.10.0
libtpu: 0.0.40
codegen_flags: <defaults>
</compile_context>

<pallas_src>
import functools

import jax
import jax.numpy as jnp
from jax import lax
from jax.experimental import pallas as pl
from jax.experimental.pallas import tpu as pltpu


_LANE = 128
# Per-pipeline-buffer budget for the (M, TK) feature slab (double-buffered by
# the Pallas pipeline).  4 MiB x 2 buffers + small resident tiles stays well
# under the 32 MiB scoped-VMEM limit on every TPU generation.
_F_TILE_BYTES_BUDGET = 4 * 1024 * 1024
_VMEM_LIMIT_BYTES = 32 * 1024 * 1024


def _choose_k_tile(m, k, itemsize):
    """Largest lane-aligned K tile whose (M, TK) slab fits the per-buffer budget."""
    if k <= _LANE:
        # Block equals the full K dim -> no lane-divisibility requirement.
        return k
    max_tk = (_F_TILE_BYTES_BUDGET // max(1, m * itemsize)) // _LANE * _LANE
    max_tk = max(_LANE, max_tk)
    k_padded = pl.cdiv(k, _LANE) * _LANE
    return min(max_tk, k_padded)


# ----------------------------- Pallas kernels ------------------------------ #

def _gram_kernel(f_ref, g_ref, acc_ref, *, inv_norm):
    # f_ref: (M, TK) feature tile, g_ref: (M, M) gram output (resident),
    # acc_ref: (M, M) f32 accumulator scratch.
    k = pl.program_id(0)

    @pl.when(k == 0)
    def _():
        acc_ref[...] = jnp.zeros_like(acc_ref)

    f = f_ref[...]
    # Contract the K axis of both operands directly (no transpose of the tile).
    acc_ref[...] += lax.dot_general(
        f, f,
        dimension_numbers=(((1,), (1,)), ((), ())),
        preferred_element_type=jnp.float32)

    @pl.when(k == pl.num_programs(0) - 1)
    def _():
        g_ref[...] = (acc_ref[...] * inv_norm).astype(g_ref.dtype)


def _style_loss_kernel(f_ref, t_ref, loss_ref, acc_ref, *, inv_norm, inv_mse):
    # f_ref: (M, TK) input feature tile
    # t_ref: (M, M) target gram matrix (resident across the K grid)
    # loss_ref: (1, 1) scalar MSE loss in SMEM (output)
    # acc_ref: (M, M) f32 accumulator scratch (the Gram never goes to HBM)
    k = pl.program_id(0)

    @pl.when(k == 0)
    def _():
        acc_ref[...] = jnp.zeros_like(acc_ref)

    f = f_ref[...]
    acc_ref[...] += lax.dot_general(
        f, f,
        dimension_numbers=(((1,), (1,)), ((), ())),
        preferred_element_type=jnp.float32)

    @pl.when(k == pl.num_programs(0) - 1)
    def _():
        g = acc_ref[...] * inv_norm
        diff = g - t_ref[...].astype(jnp.float32)
        loss_ref[0, 0] = jnp.sum(diff * diff) * inv_mse


# ------------------------------ JAX wrappers -------------------------------- #

@jax.jit
def gram_matrix(x):
    """Pallas gram matrix of an NCHW tensor: (N*C, N*C) float32."""
    a, b, c, d = x.shape
    m, k = a * b, c * d
    inv_norm = 1.0 / float(a * b * c * d)

    feats = x.reshape(m, k)                       # native dtype, no upcast
    itemsize = jnp.dtype(feats.dtype).itemsize
    tk = _choose_k_tile(m, k, itemsize)
    kp = pl.cdiv(k, tk) * tk
    if kp != k:
        # Zero columns do not change F @ F^T.
        feats = jnp.pad(feats, ((0, 0), (0, kp - k)))
    n_steps = kp // tk

    kern = functools.partial(_gram_kernel, inv_norm=inv_norm)
    return pl.pallas_call(
        kern,
        out_shape=jax.ShapeDtypeStruct((m, m), jnp.float32),
        grid=(n_steps,),
        in_specs=[pl.BlockSpec((m, tk), lambda kk: (0, kk))],
        out_specs=pl.BlockSpec((m, m), lambda kk: (0, 0)),
        scratch_shapes=[pltpu.VMEM((m, m), jnp.float32)],
        compiler_params=pltpu.CompilerParams(
            dimension_semantics=("arbitrary",),
            vmem_limit_bytes=_VMEM_LIMIT_BYTES),
        cost_estimate=pl.CostEstimate(
            flops=2 * m * m * kp,
            transcendentals=0,
            bytes_accessed=m * kp * itemsize + m * m * 4),
    )(feats)


@jax.jit
def _style_loss(x, target):
    """Fused gram(x) + MSE(gram, target); returns only the scalar loss."""
    a, b, c, d = x.shape
    m, k = a * b, c * d
    inv_norm = 1.0 / float(a * b * c * d)
    inv_mse = 1.0 / float(m * m)

    feats = x.reshape(m, k)                       # native dtype, no upcast
    itemsize = jnp.dtype(feats.dtype).itemsize
    tk = _choose_k_tile(m, k, itemsize)
    kp = pl.cdiv(k, tk) * tk
    if kp != k:
        feats = jnp.pad(feats, ((0, 0), (0, kp - k)))
    n_steps = kp // tk

    kern = functools.partial(_style_loss_kernel,
                             inv_norm=inv_norm, inv_mse=inv_mse)
    loss = pl.pallas_call(
        kern,
        out_shape=jax.ShapeDtypeStruct((1, 1), jnp.float32),
        grid=(n_steps,),
        in_specs=[
            pl.BlockSpec((m, tk), lambda kk: (0, kk)),
            pl.BlockSpec((m, m), lambda kk: (0, 0)),
        ],
        # Scalar loss only -> SMEM output; no (M, M) Gram writeback to HBM.
        out_specs=pl.BlockSpec(memory_space=pltpu.MemorySpace.SMEM),
        scratch_shapes=[pltpu.VMEM((m, m), jnp.float32)],
        compiler_params=pltpu.CompilerParams(
            dimension_semantics=("arbitrary",),
            vmem_limit_bytes=_VMEM_LIMIT_BYTES),
        cost_estimate=pl.CostEstimate(
            flops=2 * m * m * kp,
            transcendentals=0,
            bytes_accessed=m * kp * itemsize + m * m * 4 + 4),
    )(feats, target)
    return loss[0, 0]


class StyleLoss:
    """JAX/Pallas port of the PyTorch StyleLoss module."""

    def __init__(self, target_feature):
        # Target gram matrix, computed once (detached constant).
        self.target = gram_matrix(target_feature)
        self.loss = None

    def __call__(self, x):
        self.loss = _style_loss(x, self.target)
        # forward returns its input unchanged (transparent loss layer)
        return x


# ---------------------------------- main ------------------------------------ #

if __name__ == "__main__":
    key = jax.random.PRNGKey(0)
    k_t, k_x = jax.random.split(key)

    # Small shapes consistent with the module: NCHW feature maps.
    N, C, H, W = 2, 4, 16, 16
    target_feature = jax.random.normal(k_t, (N, C, H, W), dtype=jnp.float32)
    x = jax.random.normal(k_x, (N, C, H, W), dtype=jnp.float32)

    module = StyleLoss(target_feature)
    out = module(x)

    jax.block_until_ready(out)
    jax.block_until_ready(module.loss)
    jax.block_until_ready(module.target)

    # Reference check in plain JAX.
    def ref_gram(inp):
        a, b, c, d = inp.shape
        f = inp.reshape(a * b, c * d)
        return (f @ f.T) / (a * b * c * d)

    G_ref = ref_gram(x)
    T_ref = ref_gram(target_feature)
    loss_ref = jnp.mean((G_ref - T_ref) ** 2)

    assert jnp.allclose(out, x), "forward must return input unchanged"
    assert jnp.allclose(module.target, T_ref, rtol=1e-5, atol=1e-6), (
        "target gram mismatch")
    assert jnp.allclose(module.loss, loss_ref, rtol=1e-5, atol=1e-6), (
        module.loss, loss_ref)

    print("KERNEL_OK")
</pallas_src>

<mosaic_0001>
module attributes {stable_mosaic.version = 11 : i64} {
  func.func @_gram_kernel(%arg0: i32, %arg1: memref<8x256xf32, #tpu.memory_space<vmem>>, %arg2: memref<8x8xf32, #tpu.memory_space<vmem>>, %arg3: memref<8x8xf32, #tpu.memory_space<vmem>>) attributes {dimension_semantics = [#tpu.dimension_semantics<arbitrary>], iteration_bounds = array<i64: 1>, scalar_prefetch = 0 : i64, scratch_operands = 1 : i64, tpu.core_type = #tpu.core_type<tc>, window_params = [{transform_indices = @transform_0, window_bounds = array<i64: 8, 256>}, {pipeline_mode = #tpu.pipeline_mode<synchronous>, transform_indices = @transform_1, window_bounds = array<i64: 8, 8>}]} {
    %c0_i32 = arith.constant 0 : i32
    %0 = arith.cmpi eq, %arg0, %c0_i32 : i32
    %1 = arith.extui %0 : i1 to i32
    %c0_i32_0 = arith.constant 0 : i32
    %2 = arith.cmpi ne, %1, %c0_i32_0 : i32
    scf.if %2 {
      %cst_8 = arith.constant 0.000000e+00 : f32
      %11 = vector.broadcast %cst_8 : f32 to vector<8x8xf32>
      %c0_9 = arith.constant 0 : index
      %c0_10 = arith.constant 0 : index
      %12 = vector.load %arg3[%c0_9, %c0_10] : memref<8x8xf32, #tpu.memory_space<vmem>>, vector<8x8xf32>
      tpu.vector_store %arg3[%c0_9, %c0_10], %11 {strides = array<i32>} : memref<8x8xf32, #tpu.memory_space<vmem>>, vector<8x8xf32>,
    } else {
    }
    %c0 = arith.constant 0 : index
    %c0_1 = arith.constant 0 : index
    %3 = vector.load %arg1[%c0, %c0_1] : memref<8x256xf32, #tpu.memory_space<vmem>>, vector<8x256xf32>
    %c0_2 = arith.constant 0 : index
    %c0_3 = arith.constant 0 : index
    %4 = vector.load %arg3[%c0_2, %c0_3] : memref<8x8xf32, #tpu.memory_space<vmem>>, vector<8x8xf32>
    %cst = arith.constant dense<0.000000e+00> : vector<8x8xf32>
    %5 = tpu.matmul %3, %3, %cst {dimension_numbers = #tpu.dot_dimension_numbers<[1], [1], [0], [0], [0, 0, 1, 0], [], []>} : vector<8x256xf32>, vector<8x256xf32>, vector<8x8xf32> -> vector<8x8xf32>
    %6 = arith.addf %4, %5 : vector<8x8xf32>
    %c0_4 = arith.constant 0 : index
    %c0_5 = arith.constant 0 : index
    %7 = vector.load %arg3[%c0_4, %c0_5] : memref<8x8xf32, #tpu.memory_space<vmem>>, vector<8x8xf32>
    tpu.vector_store %arg3[%c0_4, %c0_5], %6 {strides = array<i32>} : memref<8x8xf32, #tpu.memory_space<vmem>>, vector<8x8xf32>,
    %c0_i32_6 = arith.constant 0 : i32
    %8 = arith.cmpi eq, %arg0, %c0_i32_6 : i32
    %9 = arith.extui %8 : i1 to i32
    %c0_i32_7 = arith.constant 0 : i32
    %10 = arith.cmpi ne, %9, %c0_i32_7 : i32
    scf.if %10 {
      %c0_8 = arith.constant 0 : index
      %c0_9 = arith.constant 0 : index
      %11 = vector.load %arg3[%c0_8, %c0_9] : memref<8x8xf32, #tpu.memory_space<vmem>>, vector<8x8xf32>
      %cst_10 = arith.constant 4.8828125E-4 : f32
      %12 = vector.broadcast %cst_10 : f32 to vector<8x8xf32>
      %13 = arith.mulf %11, %12 : vector<8x8xf32>
      %c0_11 = arith.constant 0 : index
      %c0_12 = arith.constant 0 : index
      %14 = vector.load %arg2[%c0_11, %c0_12] : memref<8x8xf32, #tpu.memory_space<vmem>>, vector<8x8xf32>
      tpu.vector_store %arg2[%c0_11, %c0_12], %13 {strides = array<i32>} : memref<8x8xf32, #tpu.memory_space<vmem>>, vector<8x8xf32>,
    } else {
    }
    return
  }
  func.func @transform_0(%arg0: i32) -> (i32, i32) {
    %c0_i32 = arith.constant 0 : i32
    %c0_i32_0 = arith.constant 0 : i32
    return %c0_i32, %arg0 : i32, i32
  }
  func.func @transform_1(%arg0: i32) -> (i32, i32) {
    %c0_i32 = arith.constant 0 : i32
    %c0_i32_0 = arith.constant 0 : i32
    %c0_i32_1 = arith.constant 0 : i32
    return %c0_i32, %c0_i32_0 : i32, i32
  }
}

</mosaic_0001>

<bundles_post_ra>
// kernel: gram_matrix.1
= control target key start
LH: loop header
LB: loop body
LE: loop exit
PB: predicated region body
PF: predicated region fallthrough
CT: control target
= control target key end

     0   :  { %vm13_vm0 = vcmask 64512   ;;  %s159_s0 = inlined_call_operand.vmem [shape: f32[8,256], index: 0, kind: input, shape index: {}]   ;;  %s160_s1 = inlined_call_operand.hbm [shape: f32[8,8], index: 1, kind: output, shape index: {}]  }
   0x1   :  { %v16_v0 = vld [vmem:[%s159_s0 + $0x8] sm:$0xff]  ;;  %v15_v1 = vld [vmem:[%s159_s0] sm:$0xff] }
   0x2   :  { %6 = vsyncpa [#allocation4], 0  ;;  %48 = vmatprep.subr.mxu0 %v16_v0  ;;  %82 = vmatprep.mubr.f32.mxu0 %v16_v0  ;;  %v135_v2 = vmov 0.0   ;;  %s136_s10 = smov [#allocation3]  }
   0x3   :  { %14 = vst.msk [vmem:[#allocation2] sm:$0xff] %vm13_vm0, %v135_v2  ;;  %49 = vmatpush1.xpose.msra.mxu0 %v15_v1  ;;  %s103_s11 = sshll.u32 %s136_s10, 4  ;;  %s104_s11 = int_to_ptr.vmem [resolvable:$true] %s103_s11 }
   0x4   :  { %s113_s0 = scalar_lea.vmem %s104_s11, 128  ;;  %p118_p1 = scmp.lt.s32.totalorder %s104_s11, %s104_s11 }
   0x5   :  { %p114_p0 = scmp.ne.s32.totalorder %s104_s11, %s113_s0  ;;  %p119_p2 = scmp.lt.s32.totalorder %s113_s0, %s113_s0 }
   0x6   :  { %83 = vmatmul.mubr.f32.vlgmr.msra.gmra.mxu0 %v15_v1 }
   0x7   :  { %p120_p3 = por %p119_p2, %p118_p1 }
   0x9   :  { %p121_p4 = pnand %p120_p3, %p114_p0 }
   0xa   :  { %v17_v3 = vld [vmem:[#allocation2] sm:$0xff] }
  0xc6   :  { %v84_v4 = vpop.f32.mrf.mxu0 }
  0xc7   :  { %v88_v5 = vadd.f32 %v84_v4, %v17_v3 }
  0xc8   :  { %v86_v6 = vpop.f32.mrf.mxu0 }
  0xc9   :  { %90 = vst.msk [vmem:[#allocation2] sm:$0xff] %vm13_vm0, %v88_v5 }
  0xd0   :  { %v94_v7 = vld [vmem:[#allocation2] sm:$0xff] }
  0xd1   :  { %v95_v8 = vmul.f32 0.00048828125, %v94_v7 }
  0xd3   :  { %96 = vst.msk [vmem:[#allocation3] sm:$0xff] %vm13_vm0, %v95_v8 }
  0xd4   :  { %124 = shalt.err (!%p121_p4)
}
  0xd5   :  { %106 = dma.vmem_to_hbm [thread:$0]  %s104_s11, 128, %s160_s1, [#allocation4]  }
  0xd6   :  { %133 = dma.done.wait [#allocation4], 128  }
  0xd7   :  { %134 = vsyncadd [#allocation4], 4294967168 }
  0xd8   :  { %110 = vsyncpa [#allocation4], 1 }

</bundles_post_ra>
